<compile_context>
chip_gen: v7x
topology: tpu7x:2x2x1
jax: 0.10.0
libtpu: 0.0.40
codegen_flags: <defaults>
</compile_context>

<pallas_src>
import functools

import jax
import jax.numpy as jnp
from jax.experimental import pallas as pl
from jax.experimental.pallas import tpu as pltpu

_VMEM_BUDGET_BYTES = 20 * 1024 * 1024  # per-tile working-set budget (all gens)


def _round_down_mult(n, m):
    return max(m, (n // m) * m)


def _round_up_mult(n, m):
    return ((n + m - 1) // m) * m


def densenet_kernel(x_ref, w1t_ref, b1_ref, w2ta_ref, w2tb_ref, b2_ref, o_ref,
                    *, d0, d0h, d1h):
    d1 = d0 + d0h
    d2 = d1 + d1h

    x1 = x_ref[...]                                     # (tb, d0)

    # dense1: Linear + ReLU (MXU matmul, f32 accumulate).
    h1 = jnp.dot(x1, w1t_ref[...], preferred_element_type=jnp.float32)
    h1 = jnp.maximum(h1 + b1_ref[...], 0.0)             # (tb, d0h)

    # dense2 on x2 = [x1, h1] WITHOUT materializing the concat:
    # W2^T was split at the d0 boundary in the wrapper.
    z = (jnp.dot(x1, w2ta_ref[...], preferred_element_type=jnp.float32)
         + jnp.dot(h1, w2tb_ref[...], preferred_element_type=jnp.float32)
         + b2_ref[...])
    # torch.nn.Hardswish: x * relu6(x + 3) / 6
    h2 = z * jnp.clip(z + 3.0, 0.0, 6.0) * (1.0 / 6.0)  # (tb, d1h)

    # Write output slices directly (no in-kernel concatenate, no lane padding).
    o_ref[:, :d0] = x1
    o_ref[:, d0:d1] = h1
    o_ref[:, d1:d2] = h2


def prepare_densenet_params(w1, b1, w2, b2):
    """One-time weight prep: transpose, split W2^T at the d0 boundary, row-biases."""
    d0h, d0 = w1.shape
    d1h, d1 = w2.shape
    assert d1 == d0 + d0h, "dense2 input dim must equal d0 + d0//2"
    f32 = jnp.float32
    w1t = jnp.asarray(w1.T, f32)                    # (d0, d0h)
    w2ta = jnp.asarray(w2[:, :d0].T, f32)           # (d0, d1h)  -- x1 part
    w2tb = jnp.asarray(w2[:, d0:].T, f32)           # (d0h, d1h) -- h1 part
    b1r = jnp.asarray(b1, f32).reshape(1, d0h)
    b2r = jnp.asarray(b2, f32).reshape(1, d1h)
    return (w1t, b1r, w2ta, w2tb, b2r)


def _pick_tile(B, d0, d0h, d1h, tile_b):
    d2 = d0 + d0h + d1h
    if tile_b is None:
        # VMEM-aware default: double-buffered x + out plus live intermediates.
        per_row = 2 * (d0 + d2) * 4 + (d0h + 2 * d1h) * 4
        tile_b = min(8192, max(8, _VMEM_BUDGET_BYTES // per_row))
    if tile_b >= B:
        return B                       # single block == full batch (always legal)
    tb = _round_down_mult(tile_b, 8)   # sublane-aligned when tiling
    # Keep the grid >= 2 steps so v7x megacore actually gets both TensorCores.
    half = max(8, _round_up_mult(pl.cdiv(B, 2), 8))
    return min(tb, half)


def densenet_forward(x1, prepared, *, tile_b=None):
    """x1: (B, d0); prepared = prepare_densenet_params(w1, b1, w2, b2).

    Returns float32 (B, d2) with d2 = d0 + d0//2 + d1//2.
    """
    w1t, b1r, w2ta, w2tb, b2r = prepared
    B, d0 = x1.shape
    d0h = w1t.shape[1]
    d1h = w2ta.shape[1]
    d1 = d0 + d0h
    d2 = d1 + d1h
    assert w1t.shape == (d0, d0h) and w2tb.shape == (d0h, d1h)

    tb = _pick_tile(B, d0, d0h, d1h, tile_b)
    grid = (pl.cdiv(B, tb),)           # ragged last block handled by Pallas

    kernel = functools.partial(densenet_kernel, d0=d0, d0h=d0h, d1h=d1h)
    return pl.pallas_call(
        kernel,
        out_shape=jax.ShapeDtypeStruct((B, d2), jnp.float32),
        grid=grid,
        in_specs=[
            pl.BlockSpec((tb, d0), lambda i: (i, 0)),      # x1: tiled over batch
            pl.BlockSpec((d0, d0h), lambda i: (0, 0)),     # weights: VMEM-resident
            pl.BlockSpec((1, d0h), lambda i: (0, 0)),
            pl.BlockSpec((d0, d1h), lambda i: (0, 0)),
            pl.BlockSpec((d0h, d1h), lambda i: (0, 0)),
            pl.BlockSpec((1, d1h), lambda i: (0, 0)),
        ],
        out_specs=pl.BlockSpec((tb, d2), lambda i: (i, 0)),
        compiler_params=pltpu.CompilerParams(
            dimension_semantics=("parallel",),
            vmem_limit_bytes=32 * 1024 * 1024),
    )(x1.astype(jnp.float32), w1t, b1r, w2ta, w2tb, b2r)


def init_densenet_params(key, mid_dim):
    """Deterministic init mirroring layer_norm(): orthogonal weights, bias=1e-6."""
    d0 = mid_dim
    d1 = int((3 / 2) ** 1 * mid_dim)
    orth = jax.nn.initializers.orthogonal(scale=1.0)
    k1, k2 = jax.random.split(key)
    w1 = orth(k1, (d0 // 2, d0), jnp.float32)
    b1 = jnp.full((d0 // 2,), 1e-6, jnp.float32)
    w2 = orth(k2, (d1 // 2, d1), jnp.float32)
    b2 = jnp.full((d1 // 2,), 1e-6, jnp.float32)
    return w1, b1, w2, b2


def densenet_reference(x1, w1, b1, w2, b2):
    h1 = jnp.maximum(x1 @ w1.T + b1, 0.0)
    x2 = jnp.concatenate([x1, h1], axis=1)
    z = x2 @ w2.T + b2
    h2 = z * jnp.clip(z + 3.0, 0.0, 6.0) / 6.0
    return jnp.concatenate([x2, h2], axis=1)


if __name__ == "__main__":
    mid_dim = 32          # d0=32, d1=48, d2=72
    batch = 2

    key = jax.random.PRNGKey(0)
    kx, kp = jax.random.split(key)
    x1 = jax.random.normal(kx, (batch, mid_dim), jnp.float32)
    w1, b1, w2, b2 = init_densenet_params(kp, mid_dim)
    prepared = prepare_densenet_params(w1, b1, w2, b2)

    # Small batch: single block equal to the full array.
    out = jax.block_until_ready(densenet_forward(x1, prepared))
    ref = densenet_reference(x1, w1, b1, w2, b2)
    assert out.shape == (batch, int((3 / 2) ** 2 * mid_dim))
    assert jnp.allclose(out, ref, atol=1e-5, rtol=1e-5)

    # Multi-step grid (exercises pipelining / megacore sharding), even split.
    x1b = jax.random.normal(kx, (64, mid_dim), jnp.float32)
    outb = jax.block_until_ready(densenet_forward(x1b, prepared, tile_b=16))
    refb = densenet_reference(x1b, w1, b1, w2, b2)
    assert jnp.allclose(outb, refb, atol=1e-5, rtol=1e-5)

    # Ragged last block: no wrapper-side pad of the batch, no output slice.
    x1c = jax.random.normal(kx, (100, mid_dim), jnp.float32)
    outc = jax.block_until_ready(densenet_forward(x1c, prepared, tile_b=16))
    refc = densenet_reference(x1c, w1, b1, w2, b2)
    assert outc.shape == (100, 72)
    assert jnp.allclose(outc, refc, atol=1e-5, rtol=1e-5)

    print("KERNEL_OK")
</pallas_src>

<mosaic_0001>
module attributes {stable_mosaic.version = 11 : i64} {
  func.func @densenet_kernel(%arg0: i32, %arg1: memref<2x32xf32, #tpu.memory_space<vmem>>, %arg2: memref<32x16xf32, #tpu.memory_space<vmem>>, %arg3: memref<1x16xf32, #tpu.memory_space<vmem>>, %arg4: memref<32x24xf32, #tpu.memory_space<vmem>>, %arg5: memref<16x24xf32, #tpu.memory_space<vmem>>, %arg6: memref<1x24xf32, #tpu.memory_space<vmem>>, %arg7: memref<2x72xf32, #tpu.memory_space<vmem>>) attributes {dimension_semantics = [#tpu.dimension_semantics<parallel>], iteration_bounds = array<i64: 1>, scalar_prefetch = 0 : i64, scratch_operands = 0 : i64, tpu.core_type = #tpu.core_type<tc>, window_params = [{transform_indices = @transform_0, window_bounds = array<i64: 2, 32>}, {pipeline_mode = #tpu.pipeline_mode<synchronous>, transform_indices = @transform_1, window_bounds = array<i64: 32, 16>}, {pipeline_mode = #tpu.pipeline_mode<synchronous>, transform_indices = @transform_2, window_bounds = array<i64: 1, 16>}, {pipeline_mode = #tpu.pipeline_mode<synchronous>, transform_indices = @transform_3, window_bounds = array<i64: 32, 24>}, {pipeline_mode = #tpu.pipeline_mode<synchronous>, transform_indices = @transform_4, window_bounds = array<i64: 16, 24>}, {pipeline_mode = #tpu.pipeline_mode<synchronous>, transform_indices = @transform_5, window_bounds = array<i64: 1, 24>}, {transform_indices = @transform_6, window_bounds = array<i64: 2, 72>}]} {
    %c0 = arith.constant 0 : index
    %c0_0 = arith.constant 0 : index
    %0 = vector.load %arg1[%c0, %c0_0] : memref<2x32xf32, #tpu.memory_space<vmem>>, vector<2x32xf32>
    %c0_1 = arith.constant 0 : index
    %c0_2 = arith.constant 0 : index
    %1 = vector.load %arg2[%c0_1, %c0_2] : memref<32x16xf32, #tpu.memory_space<vmem>>, vector<32x16xf32>
    %cst = arith.constant dense<0.000000e+00> : vector<2x16xf32>
    %2 = tpu.matmul %0, %1, %cst {dimension_numbers = #tpu.dot_dimension_numbers<[1], [0], [0], [1], [0, 0, 1, 1], [], []>} : vector<2x32xf32>, vector<32x16xf32>, vector<2x16xf32> -> vector<2x16xf32>
    %c0_3 = arith.constant 0 : index
    %c0_4 = arith.constant 0 : index
    %3 = vector.load %arg3[%c0_3, %c0_4] : memref<1x16xf32, #tpu.memory_space<vmem>>, vector<1x16xf32>
    %4 = vector.broadcast %3 : vector<1x16xf32> to vector<2x16xf32>
    %5 = arith.addf %2, %4 : vector<2x16xf32>
    %cst_5 = arith.constant 0.000000e+00 : f32
    %6 = vector.broadcast %cst_5 : f32 to vector<2x16xf32>
    %7 = arith.maximumf %5, %6 : vector<2x16xf32>
    %c0_6 = arith.constant 0 : index
    %c0_7 = arith.constant 0 : index
    %8 = vector.load %arg4[%c0_6, %c0_7] : memref<32x24xf32, #tpu.memory_space<vmem>>, vector<32x24xf32>
    %cst_8 = arith.constant dense<0.000000e+00> : vector<2x24xf32>
    %9 = tpu.matmul %0, %8, %cst_8 {dimension_numbers = #tpu.dot_dimension_numbers<[1], [0], [0], [1], [0, 0, 1, 1], [], []>} : vector<2x32xf32>, vector<32x24xf32>, vector<2x24xf32> -> vector<2x24xf32>
    %c0_9 = arith.constant 0 : index
    %c0_10 = arith.constant 0 : index
    %10 = vector.load %arg5[%c0_9, %c0_10] : memref<16x24xf32, #tpu.memory_space<vmem>>, vector<16x24xf32>
    %cst_11 = arith.constant dense<0.000000e+00> : vector<2x24xf32>
    %11 = tpu.matmul %7, %10, %cst_11 {dimension_numbers = #tpu.dot_dimension_numbers<[1], [0], [0], [1], [0, 0, 1, 1], [], []>} : vector<2x16xf32>, vector<16x24xf32>, vector<2x24xf32> -> vector<2x24xf32>
    %12 = arith.addf %9, %11 : vector<2x24xf32>
    %c0_12 = arith.constant 0 : index
    %c0_13 = arith.constant 0 : index
    %13 = vector.load %arg6[%c0_12, %c0_13] : memref<1x24xf32, #tpu.memory_space<vmem>>, vector<1x24xf32>
    %14 = vector.broadcast %13 : vector<1x24xf32> to vector<2x24xf32>
    %15 = arith.addf %12, %14 : vector<2x24xf32>
    %cst_14 = arith.constant 3.000000e+00 : f32
    %16 = vector.broadcast %cst_14 : f32 to vector<2x24xf32>
    %17 = arith.addf %15, %16 : vector<2x24xf32>
    %cst_15 = arith.constant 0.000000e+00 : f32
    %cst_16 = arith.constant 6.000000e+00 : f32
    %18 = vector.broadcast %cst_15 : f32 to vector<2x24xf32>
    %19 = arith.maximumf %18, %17 : vector<2x24xf32>
    %20 = vector.broadcast %cst_16 : f32 to vector<2x24xf32>
    %21 = arith.minimumf %20, %19 : vector<2x24xf32>
    %22 = arith.mulf %15, %21 : vector<2x24xf32>
    %cst_17 = arith.constant 0.166666672 : f32
    %23 = vector.broadcast %cst_17 : f32 to vector<2x24xf32>
    %24 = arith.mulf %22, %23 : vector<2x24xf32>
    %c0_18 = arith.constant 0 : index
    %c0_19 = arith.constant 0 : index
    %25 = vector.load %arg7[%c0_18, %c0_19] : memref<2x72xf32, #tpu.memory_space<vmem>>, vector<2x32xf32>
    tpu.vector_store %arg7[%c0_18, %c0_19], %0 {strides = array<i32>} : memref<2x72xf32, #tpu.memory_space<vmem>>, vector<2x32xf32>,
    %c0_20 = arith.constant 0 : index
    %c32 = arith.constant 32 : index
    %26 = vector.load %arg7[%c0_20, %c32] : memref<2x72xf32, #tpu.memory_space<vmem>>, vector<2x16xf32>
    tpu.vector_store %arg7[%c0_20, %c32], %7 {strides = array<i32>} : memref<2x72xf32, #tpu.memory_space<vmem>>, vector<2x16xf32>,
    %c0_21 = arith.constant 0 : index
    %c48 = arith.constant 48 : index
    %27 = vector.load %arg7[%c0_21, %c48] : memref<2x72xf32, #tpu.memory_space<vmem>>, vector<2x24xf32>
    tpu.vector_store %arg7[%c0_21, %c48], %24 {strides = array<i32>} : memref<2x72xf32, #tpu.memory_space<vmem>>, vector<2x24xf32>,
    return
  }
  func.func @transform_0(%arg0: i32) -> (i32, i32) {
    %c0_i32 = arith.constant 0 : i32
    %c0_i32_0 = arith.constant 0 : i32
    return %arg0, %c0_i32 : i32, i32
  }
  func.func @transform_1(%arg0: i32) -> (i32, i32) {
    %c0_i32 = arith.constant 0 : i32
    %c0_i32_0 = arith.constant 0 : i32
    %c0_i32_1 = arith.constant 0 : i32
    return %c0_i32, %c0_i32_0 : i32, i32
  }
  func.func @transform_2(%arg0: i32) -> (i32, i32) {
    %c0_i32 = arith.constant 0 : i32
    %c0_i32_0 = arith.constant 0 : i32
    %c0_i32_1 = arith.constant 0 : i32
    return %c0_i32, %c0_i32_0 : i32, i32
  }
  func.func @transform_3(%arg0: i32) -> (i32, i32) {
    %c0_i32 = arith.constant 0 : i32
    %c0_i32_0 = arith.constant 0 : i32
    %c0_i32_1 = arith.constant 0 : i32
    return %c0_i32, %c0_i32_0 : i32, i32
  }
  func.func @transform_4(%arg0: i32) -> (i32, i32) {
    %c0_i32 = arith.constant 0 : i32
    %c0_i32_0 = arith.constant 0 : i32
    %c0_i32_1 = arith.constant 0 : i32
    return %c0_i32, %c0_i32_0 : i32, i32
  }
  func.func @transform_5(%arg0: i32) -> (i32, i32) {
    %c0_i32 = arith.constant 0 : i32
    %c0_i32_0 = arith.constant 0 : i32
    %c0_i32_1 = arith.constant 0 : i32
    return %c0_i32, %c0_i32_0 : i32, i32
  }
  func.func @transform_6(%arg0: i32) -> (i32, i32) {
    %c0_i32 = arith.constant 0 : i32
    %c0_i32_0 = arith.constant 0 : i32
    return %arg0, %c0_i32 : i32, i32
  }
}

</mosaic_0001>

<bundles_post_ra>
// kernel: tpu_custom_call.1
= control target key start
LH: loop header
LB: loop body
LE: loop exit
PB: predicated region body
PF: predicated region fallthrough
CT: control target
= control target key end

     0   :  { %v393_v3 = vmov 0.0|0.0   ;;  %vm394_vm0 = vmmov 0   ;;  %v395_v6 = vmov 0.0   ;;  %s490_s0 = inlined_call_operand.vmem [shape: f32[2,32], index: 0, kind: input, shape index: {}]   ;;  %s491_s1 = inlined_call_operand.vmem [shape: f32[32,16], index: 1, kind: input, shape index: {}]   ;;  %s492_s2 = inlined_call_operand.vmem [shape: f32[1,16], index: 2, kind: input, shape index: {}]   ;;  %s493_s3 = inlined_call_operand.vmem [shape: f32[32,24], index: 3, kind: input, shape index: {}]   ;;  %s494_s4 = inlined_call_operand.vmem [shape: f32[16,24], index: 4, kind: input, shape index: {}]   ;;  %s495_s5 = inlined_call_operand.vmem [shape: f32[1,24], index: 5, kind: input, shape index: {}]   ;;  %s496_s6 = inlined_call_operand.hbm [shape: f32[2,72], index: 6, kind: output, shape index: {}]  }
   0x1   :  { %v25_v0 = vld [vmem:[%s491_s1] sm:$0xff]  ;;  %v26_v1 = vld [vmem:[%s491_s1 + $0x8] sm:$0xff]  ;;  %v27_v2 = vld [vmem:[%s491_s1 + $0x10] sm:$0xff]  ;;  %348 = vmatprep.subr.bf16.mxu0 %v393_v3  ;;  %327 = vmatprep.mubr.msk.f32.mxu0 %vm394_vm0, %v395_v6 }
   0x2   :  { %v349_v4 = vpack.c.bf16 %v26_v1, %v25_v0  ;;  %v28_v5 = vld [vmem:[%s491_s1 + $0x18] sm:$0xff]  ;;  %354 = vmatprep.subr.bf16.mxu1 %v393_v3  ;;  %334 = vmatprep.mubr.msk.f32.mxu1 %vm394_vm0, %v395_v6 }
   0x3   :  { %11 = vsyncpa [#allocation3], 0  ;;  %v352_v7 = vpack.c.bf16 %v28_v5, %v27_v2  ;;  %v24_v8 = vld [vmem:[%s490_s0] sm:$0x3]  ;;  %vm36_vm1 = vcmask 261120   ;;  %v116_v10 = vld [vmem:[%s494_s4 + $0x8] sm:$0xff] }
   0x4   :  { %350 = vmatpush3.bf16.msra.mxu0 %v349_v4  ;;  %v115_v9 = vld [vmem:[%s494_s4] sm:$0xff]  ;;  %vm274_vm2 = vcmask 254976   ;;  %v112_v14 = vld [vmem:[%s493_s3 + $0x8] sm:$0xff]  ;;  %vm117_vm3 = vcmask 130048   ;;  %v113_v20 = vld [vmem:[%s493_s3 + $0x10] sm:$0xff]  ;;  %s396_s17 = smov 32  }
   0x5   :  { %351 = vmatprep.subr.bf16.mxu0 %v393_v3  ;;  %v355_v11 = vpack.c.bf16 %v116_v10, %v115_v9  ;;  %275 = vst.msk [vmem:[#allocation2] sm:$0x3] %vm274_vm2, %v24_v8  ;;  %v301_v12 = vld [vmem:[%s492_s2] ss:$0 sm:$0xff]  ;;  %v114_v21 = vld [vmem:[%s493_s3 + $0x18] sm:$0xff]  ;;  %vm279_vm4 = vcmask 386304  }
   0x6   :  { %v111_v13 = vld [vmem:[%s493_s3] sm:$0xff]  ;;  %v361_v22 = vpack.c.bf16 %v114_v21, %v113_v20  ;;  %s397_s3 = smov 48   ;;  %s398_s20 = smov [#allocation2]   ;;  %vm285_vm5 = vcmask 583040  }
   0x7   :  { %356 = vmatpush3.bf16.msra.mxu1 %v355_v11  ;;  %v358_v18 = vpack.c.bf16 %v112_v14, %v111_v13  ;;  %v305_v27 = vld [vmem:[%s495_s5] ss:$0 sm:$0xff]  ;;  %s293_s21 = sshll.u32 %s398_s20, 4  ;;  %s294_s21 = int_to_ptr.vmem [resolvable:$true] %s293_s21 }
   0x8   :  { %353 = vmatpush3.bf16.msra.mxu0 %v352_v7  ;;  %357 = vmatprep.subr.bf16.mxu1 %v393_v3  ;;  %s369_s22 = scalar_lea.vmem %s294_s21, 32  ;;  %p374_p1 = scmp.lt.s32.totalorder %s294_s21, %s294_s21 }
   0x9   :  { %p370_p0 = scmp.ne.s32.totalorder %s294_s21, %s369_s22  ;;  %p375_p2 = scmp.lt.s32.totalorder %s369_s22, %s369_s22 }
   0xb   :  { %328 = vmatmul.mubr.msk.f32.vlgmr.msra.gmra.mrb[0].mxu0 %vm36_vm1, %v24_v8  ;;  %p376_p3 = por %p375_p2, %p374_p1 }
   0xd   :  { %p377_p4 = pnand %p376_p3, %p370_p0 }
  0xde   :  { %v106_v15 = vpop.f32.mrb[0].mxu0 }
  0xdf   :  { %v107_v16 = vadd.f32 %v301_v12, %v106_v15  ;;  %v329_v17 = vpop.f32.mrb[1].mxu0 }
  0xe1   :  { %v110_v19 = vmax.f32 %v107_v16, 0.0 }
  0xe3   :  { %276 = vrot.lane.b32.xlu0 %v110_v19, %s396_s17  ;;  %335 = vmatmul.mubr.msk.f32.vlgmr.msra.gmra.mrb[0].mxu1 %vm117_vm3, %v110_v19 }
  0xe4   :  { %359 = vmatpush3.bf16.msra.mxu1 %v358_v18  ;;  %345 = vmatprep.mubr.msk.f32.mxu1 %vm394_vm0, %v395_v6 }
  0xe5   :  { %360 = vmatprep.subr.bf16.mxu1 %v393_v3 }
  0xe8   :  { %362 = vmatpush3.bf16.msra.mxu1 %v361_v22 }
  0xeb   :  { %346 = vmatmul.mubr.msk.f32.vlgmr.msra.gmra.mrb[2].mxu1 %vm36_vm1, %v24_v8 }
 0x155   :  { %v277_v23 = vpop.permute.xlu0 %276 }
 0x156   :  { %280 = vst.msk [vmem:[#allocation2] sm:$0x3] %vm279_vm4, %v277_v23 }
 0x1b6   :  { %v187_v24 = vpop.f32.mrb[0].mxu1 }
 0x1b7   :  { %v336_v25 = vpop.f32.mrb[1].mxu1 }
 0x1be   :  { %v257_v26 = vpop.f32.mrb[2].mxu1 }
 0x1bf   :  { %v258_v28 = vadd.f32 %v257_v26, %v187_v24  ;;  %v347_v29 = vpop.f32.mrb[3].mxu1 }
 0x1c1   :  { %v268_v30 = vadd.f32 %v305_v27, %v258_v28 }
 0x1c3   :  { %v269_v31 = vadd.f32 3.0, %v268_v30 }
 0x1c5   :  { %v270_v32 = vmax.f32 %v269_v31, 0.0 }
 0x1c7   :  { %v271_v33 = vmin.f32 %v270_v32, 6.0 }
 0x1c9   :  { %v272_v34 = vmul.f32 %v271_v33, %v268_v30 }
 0x1cb   :  { %v273_v35 = vmul.f32 0.16666667, %v272_v34 }
 0x1cd   :  { %282 = vrot.lane.b32.xlu0 %v273_v35, %s397_s3 }
 0x23f   :  { %v283_v36 = vpop.permute.xlu0 %282 }
 0x240   :  { %286 = vst.msk [vmem:[#allocation2] sm:$0x3] %vm285_vm5, %v283_v36 }
 0x241   :  { %380 = shalt.err (!%p377_p4)
}
 0x242   :  { %s381_s24 = scalar_lea.hbm %s496_s6, 32 }
 0x243   :  { %p382_p5 = scmp.ne.s32.totalorder %s496_s6, %s381_s24  ;;  %p385_p6 = scmp.lt.u32.totalorder %s381_s24, %s496_s6 }
 0x245   :  { %p387_p7 = pnand %p385_p6, %p382_p5 }
 0x247   :  { %390 = shalt.err (!%p387_p7)
}
 0x248   :  { %296 = dma.vmem_to_hbm [thread:$0]  %s294_s21, 32, %s496_s6, [#allocation3]  }
 0x249   :  { %391 = dma.done.wait [#allocation3], 32  }
 0x24a   :  { %392 = vsyncadd [#allocation3], 4294967264 }
 0x24b   :  { %300 = vsyncpa [#allocation3], 1 }

</bundles_post_ra>
